<compile_context>
chip_gen: v5e
topology: v5e:2x2
jax: 0.10.0
libtpu: 0.0.40
codegen_flags: <defaults>
</compile_context>

<pallas_src>
import jax
import jax.numpy as jnp
from jax.experimental import pallas as pl
from jax.experimental.pallas import tpu as pltpu


def _make_cmi_kernel(n_groups):
    """Build the fused MLP kernel for `n_groups` concatenated input blocks.

    Ref order: x_0..x_{n-1}, w1t_0..w1t_{n-1}, b1 (1,H), w2 (1,H),
               b2 (SMEM, (1,)), out (1, tb).
    """
    def kernel(*refs):
        x_refs = refs[:n_groups]
        w_refs = refs[n_groups:2 * n_groups]
        b1_ref, w2_ref, b2_ref, o_ref = refs[2 * n_groups:]

        # Layer 1: fused concat -> one small-K MXU matmul per input group,
        # accumulated in f32 (mathematically == concat(xs, axis=1) @ W1^T).
        acc = jnp.dot(x_refs[0][...], w_refs[0][...],
                      preferred_element_type=jnp.float32)
        for x_r, w_r in zip(x_refs[1:], w_refs[1:]):
            acc = acc + jnp.dot(x_r[...], w_r[...],
                                preferred_element_type=jnp.float32)
        h = jnp.maximum(acc + b1_ref[...], 0.0)                  # (tb, H) f32

        # Layer 2 (H -> 1): VPU broadcast-multiply + lane reduction; an MXU
        # matmul with N=1 would waste 127/128 of the output columns.
        t = jnp.sum(h * w2_ref[...], axis=-1) + b2_ref[0]        # (tb,)

        # Lane-dense store: one (1, tb) row instead of tb masked 1-lane stores.
        o_ref[...] = t[None, :].astype(o_ref.dtype)
    return kernel


def _cmi_mlp_pallas(xs, w1, b1, w2, b2, *, max_rows_per_step=1024):
    """xs: tuple of (B, d_i) arrays (implicitly concatenated along axis 1).
    w1: (H, sum(d_i)); b1: (H,); w2: (1, H); b2: (1,). Returns (B, 1)."""
    B = int(xs[0].shape[0])
    widths = [int(x.shape[1]) for x in xs]
    H = int(w1.shape[0])

    # One-time weight prep on the host side (no per-step transposes in-kernel):
    # split W1 along its input axis to match the input groups, then transpose.
    w1 = jnp.asarray(w1)
    offs = [0]
    for d in widths:
        offs.append(offs[-1] + d)
    w1_slices = [w1[:, offs[i]:offs[i + 1]].T for i in range(len(xs))]  # (d_i, H)
    b1_row = jnp.asarray(b1).reshape(1, H)
    w2_row = jnp.asarray(w2).reshape(1, H)
    b2_vec = jnp.asarray(b2).reshape(1)          # scalar bias, lives in SMEM

    # Row tiling: single full-batch block for small B (no padding copy needed),
    # otherwise fixed 1024-row tiles (multiple of 8 and 128) with a
    # Pallas-masked ragged tail.
    if B <= max_rows_per_step:
        tb, num_blocks = B, 1
    else:
        tb = max_rows_per_step
        num_blocks = pl.cdiv(B, tb)
    n_cols = num_blocks * tb

    in_specs = (
        [pl.BlockSpec((tb, d), lambda i: (i, 0)) for d in widths]       # x rows
        + [pl.BlockSpec((d, H), lambda i: (0, 0)) for d in widths]      # W1^T blocks
        + [pl.BlockSpec((1, H), lambda i: (0, 0)),                      # b1
           pl.BlockSpec((1, H), lambda i: (0, 0)),                      # w2 row
           pl.BlockSpec(memory_space=pltpu.MemorySpace.SMEM)]           # b2 scalar
    )

    out = pl.pallas_call(
        _make_cmi_kernel(len(xs)),
        out_shape=jax.ShapeDtypeStruct((1, n_cols), xs[0].dtype),
        grid_spec=pl.GridSpec(
            grid=(num_blocks,),
            in_specs=in_specs,
            out_specs=pl.BlockSpec((1, tb), lambda i: (0, i)),          # lane-dense
        ),
        compiler_params=pltpu.CompilerParams(
            dimension_semantics=("parallel",)),
    )(*xs, *w1_slices, b1_row, w2_row, b2_vec)

    # Column j of the (1, G*tb) output is batch row j; ragged-tail garbage
    # columns (if any) are discarded here.
    return out.reshape(-1, 1)[:B]


def cmi_estimator_forward(params, z, x1, x2, x3):
    """Mirrors ConditionalMutualInformationEstimator.forward."""
    w1, b1, w2, b2 = params
    if x1 is not None and x2 is not None:
        xs = (z, x1, x2, x3)        # == torch.cat([z, x1, cat([x2, x3], 1)], 1)
    elif x1 is None and x2 is None:
        xs = (z, x3)
    else:
        raise ValueError('Either provide both x1 and x2, or neither.')
    return _cmi_mlp_pallas(xs, w1, b1, w2, b2)


def cmi_estimator_ref(params, z, x1, x2, x3):
    # Pure-JAX reference in full f32 matmul precision.
    w1, b1, w2, b2 = params
    if x1 is not None and x2 is not None:
        inp = jnp.concatenate([z, x1, x2, x3], axis=1)
    else:
        inp = jnp.concatenate([z, x3], axis=1)
    hp = jax.lax.Precision.HIGHEST
    h = jnp.maximum(jnp.dot(inp, w1.T, precision=hp) + b1, 0.0)
    return jnp.dot(h, w2.T, precision=hp) + b2


if __name__ == "__main__":
    # Small shapes consistent with the module:
    # input_dim_z=16, input_dim_x1=8, input_dim_x2x3=8 (x2: 4, x3: 4), hidden_dim=128.
    B = 8
    dz, dx1, dx2, dx3 = 16, 8, 4, 4
    hidden = 128
    d_in = dz + dx1 + dx2 + dx3

    key = jax.random.PRNGKey(0)
    kz, k1, k2, k3, kw1, kb1, kw2, kb2 = jax.random.split(key, 8)

    z = jax.random.normal(kz, (B, dz), dtype=jnp.float32)
    x1 = jax.random.normal(k1, (B, dx1), dtype=jnp.float32)
    x2 = jax.random.normal(k2, (B, dx2), dtype=jnp.float32)
    x3 = jax.random.normal(k3, (B, dx3), dtype=jnp.float32)

    # nn.Linear-style deterministic init: W (out, in), b (out,)
    s1 = 1.0 / jnp.sqrt(d_in)
    s2 = 1.0 / jnp.sqrt(hidden)
    w1 = jax.random.uniform(kw1, (hidden, d_in), minval=-s1, maxval=s1, dtype=jnp.float32)
    b1 = jax.random.uniform(kb1, (hidden,), minval=-s1, maxval=s1, dtype=jnp.float32)
    w2 = jax.random.uniform(kw2, (1, hidden), minval=-s2, maxval=s2, dtype=jnp.float32)
    b2 = jax.random.uniform(kb2, (1,), minval=-s2, maxval=s2, dtype=jnp.float32)

    params = (w1, b1, w2, b2)

    out = cmi_estimator_forward(params, z, x1, x2, x3)
    out = jax.block_until_ready(out)

    ref = cmi_estimator_ref(params, z, x1, x2, x3)
    assert out.shape == (B, 1)
    # Tolerance accommodates the TPU default MXU matmul precision (f32 inputs
    # may be processed as bf16 passes) relative to the HIGHEST-precision reference.
    assert jnp.allclose(out, ref, atol=5e-3, rtol=5e-3), "mismatch vs reference"

    print("KERNEL_OK")
</pallas_src>

<mosaic_0001>
module attributes {stable_mosaic.version = 11 : i64} {
  func.func @kernel(%arg0: i32, %arg1: memref<8x16xf32, #tpu.memory_space<vmem>>, %arg2: memref<8x8xf32, #tpu.memory_space<vmem>>, %arg3: memref<8x4xf32, #tpu.memory_space<vmem>>, %arg4: memref<8x4xf32, #tpu.memory_space<vmem>>, %arg5: memref<16x128xf32, #tpu.memory_space<vmem>>, %arg6: memref<8x128xf32, #tpu.memory_space<vmem>>, %arg7: memref<4x128xf32, #tpu.memory_space<vmem>>, %arg8: memref<4x128xf32, #tpu.memory_space<vmem>>, %arg9: memref<1x128xf32, #tpu.memory_space<vmem>>, %arg10: memref<1x128xf32, #tpu.memory_space<vmem>>, %arg11: memref<1xf32, #tpu.memory_space<smem>>, %arg12: memref<1x8xf32, #tpu.memory_space<vmem>>) attributes {dimension_semantics = [#tpu.dimension_semantics<parallel>], iteration_bounds = array<i64: 1>, scalar_prefetch = 0 : i64, scratch_operands = 0 : i64, tpu.core_type = #tpu.core_type<tc>, window_params = [{transform_indices = @transform_0, window_bounds = array<i64: 8, 16>}, {transform_indices = @transform_1, window_bounds = array<i64: 8, 8>}, {transform_indices = @transform_2, window_bounds = array<i64: 8, 4>}, {transform_indices = @transform_3, window_bounds = array<i64: 8, 4>}, {pipeline_mode = #tpu.pipeline_mode<synchronous>, transform_indices = @transform_4, window_bounds = array<i64: 16, 128>}, {pipeline_mode = #tpu.pipeline_mode<synchronous>, transform_indices = @transform_5, window_bounds = array<i64: 8, 128>}, {pipeline_mode = #tpu.pipeline_mode<synchronous>, transform_indices = @transform_6, window_bounds = array<i64: 4, 128>}, {pipeline_mode = #tpu.pipeline_mode<synchronous>, transform_indices = @transform_7, window_bounds = array<i64: 4, 128>}, {pipeline_mode = #tpu.pipeline_mode<synchronous>, transform_indices = @transform_8, window_bounds = array<i64: 1, 128>}, {pipeline_mode = #tpu.pipeline_mode<synchronous>, transform_indices = @transform_9, window_bounds = array<i64: 1, 128>}, {transform_indices = @transform_10, window_bounds = array<i64: 1>}, {transform_indices = @transform_11, window_bounds = array<i64: 1, 8>}]} {
    %c0 = arith.constant 0 : index
    %c0_0 = arith.constant 0 : index
    %0 = vector.load %arg1[%c0, %c0_0] : memref<8x16xf32, #tpu.memory_space<vmem>>, vector<8x16xf32>
    %c0_1 = arith.constant 0 : index
    %c0_2 = arith.constant 0 : index
    %1 = vector.load %arg5[%c0_1, %c0_2] : memref<16x128xf32, #tpu.memory_space<vmem>>, vector<16x128xf32>
    %cst = arith.constant dense<0.000000e+00> : vector<8x128xf32>
    %2 = tpu.matmul %0, %1, %cst {dimension_numbers = #tpu.dot_dimension_numbers<[1], [0], [0], [1], [0, 0, 1, 1], [], []>} : vector<8x16xf32>, vector<16x128xf32>, vector<8x128xf32> -> vector<8x128xf32>
    %c0_3 = arith.constant 0 : index
    %c0_4 = arith.constant 0 : index
    %3 = vector.load %arg2[%c0_3, %c0_4] : memref<8x8xf32, #tpu.memory_space<vmem>>, vector<8x8xf32>
    %c0_5 = arith.constant 0 : index
    %c0_6 = arith.constant 0 : index
    %4 = vector.load %arg6[%c0_5, %c0_6] : memref<8x128xf32, #tpu.memory_space<vmem>>, vector<8x128xf32>
    %cst_7 = arith.constant dense<0.000000e+00> : vector<8x128xf32>
    %5 = tpu.matmul %3, %4, %cst_7 {dimension_numbers = #tpu.dot_dimension_numbers<[1], [0], [0], [1], [0, 0, 1, 1], [], []>} : vector<8x8xf32>, vector<8x128xf32>, vector<8x128xf32> -> vector<8x128xf32>
    %6 = arith.addf %2, %5 : vector<8x128xf32>
    %c0_8 = arith.constant 0 : index
    %c0_9 = arith.constant 0 : index
    %7 = vector.load %arg3[%c0_8, %c0_9] : memref<8x4xf32, #tpu.memory_space<vmem>>, vector<8x4xf32>
    %c0_10 = arith.constant 0 : index
    %c0_11 = arith.constant 0 : index
    %8 = vector.load %arg7[%c0_10, %c0_11] : memref<4x128xf32, #tpu.memory_space<vmem>>, vector<4x128xf32>
    %cst_12 = arith.constant dense<0.000000e+00> : vector<8x128xf32>
    %9 = tpu.matmul %7, %8, %cst_12 {dimension_numbers = #tpu.dot_dimension_numbers<[1], [0], [0], [1], [0, 0, 1, 1], [], []>} : vector<8x4xf32>, vector<4x128xf32>, vector<8x128xf32> -> vector<8x128xf32>
    %10 = arith.addf %6, %9 : vector<8x128xf32>
    %c0_13 = arith.constant 0 : index
    %c0_14 = arith.constant 0 : index
    %11 = vector.load %arg4[%c0_13, %c0_14] : memref<8x4xf32, #tpu.memory_space<vmem>>, vector<8x4xf32>
    %c0_15 = arith.constant 0 : index
    %c0_16 = arith.constant 0 : index
    %12 = vector.load %arg8[%c0_15, %c0_16] : memref<4x128xf32, #tpu.memory_space<vmem>>, vector<4x128xf32>
    %cst_17 = arith.constant dense<0.000000e+00> : vector<8x128xf32>
    %13 = tpu.matmul %11, %12, %cst_17 {dimension_numbers = #tpu.dot_dimension_numbers<[1], [0], [0], [1], [0, 0, 1, 1], [], []>} : vector<8x4xf32>, vector<4x128xf32>, vector<8x128xf32> -> vector<8x128xf32>
    %14 = arith.addf %10, %13 : vector<8x128xf32>
    %c0_18 = arith.constant 0 : index
    %c0_19 = arith.constant 0 : index
    %15 = vector.load %arg9[%c0_18, %c0_19] : memref<1x128xf32, #tpu.memory_space<vmem>>, vector<1x128xf32>
    %16 = vector.broadcast %15 : vector<1x128xf32> to vector<8x128xf32>
    %17 = arith.addf %14, %16 : vector<8x128xf32>
    %cst_20 = arith.constant 0.000000e+00 : f32
    %18 = vector.broadcast %cst_20 : f32 to vector<8x128xf32>
    %19 = arith.maximumf %17, %18 : vector<8x128xf32>
    %c0_21 = arith.constant 0 : index
    %c0_22 = arith.constant 0 : index
    %20 = vector.load %arg10[%c0_21, %c0_22] : memref<1x128xf32, #tpu.memory_space<vmem>>, vector<1x128xf32>
    %21 = vector.broadcast %20 : vector<1x128xf32> to vector<8x128xf32>
    %22 = arith.mulf %19, %21 : vector<8x128xf32>
    %cst_23 = arith.constant dense<0.000000e+00> : vector<8xf32>
    %23 = vector.multi_reduction <add>, %22, %cst_23 [1] : vector<8x128xf32> to vector<8xf32>
    %c0_24 = arith.constant 0 : index
    %24 = memref.load %arg11[%c0_24] : memref<1xf32, #tpu.memory_space<smem>>
    %25 = vector.broadcast %24 : f32 to vector<8xf32>
    %26 = arith.addf %23, %25 : vector<8xf32>
    %27 = vector.shape_cast %26 : vector<8xf32> to vector<1x8xf32>
    %c0_25 = arith.constant 0 : index
    %c0_26 = arith.constant 0 : index
    %28 = vector.load %arg12[%c0_25, %c0_26] : memref<1x8xf32, #tpu.memory_space<vmem>>, vector<1x8xf32>
    tpu.vector_store %arg12[%c0_25, %c0_26], %27 {strides = array<i32>} : memref<1x8xf32, #tpu.memory_space<vmem>>, vector<1x8xf32>,
    return
  }
  func.func @transform_0(%arg0: i32) -> (i32, i32) {
    %c0_i32 = arith.constant 0 : i32
    %c0_i32_0 = arith.constant 0 : i32
    return %arg0, %c0_i32 : i32, i32
  }
  func.func @transform_1(%arg0: i32) -> (i32, i32) {
    %c0_i32 = arith.constant 0 : i32
    %c0_i32_0 = arith.constant 0 : i32
    return %arg0, %c0_i32 : i32, i32
  }
  func.func @transform_2(%arg0: i32) -> (i32, i32) {
    %c0_i32 = arith.constant 0 : i32
    %c0_i32_0 = arith.constant 0 : i32
    return %arg0, %c0_i32 : i32, i32
  }
  func.func @transform_3(%arg0: i32) -> (i32, i32) {
    %c0_i32 = arith.constant 0 : i32
    %c0_i32_0 = arith.constant 0 : i32
    return %arg0, %c0_i32 : i32, i32
  }
  func.func @transform_4(%arg0: i32) -> (i32, i32) {
    %c0_i32 = arith.constant 0 : i32
    %c0_i32_0 = arith.constant 0 : i32
    %c0_i32_1 = arith.constant 0 : i32
    return %c0_i32, %c0_i32_0 : i32, i32
  }
  func.func @transform_5(%arg0: i32) -> (i32, i32) {
    %c0_i32 = arith.constant 0 : i32
    %c0_i32_0 = arith.constant 0 : i32
    %c0_i32_1 = arith.constant 0 : i32
    return %c0_i32, %c0_i32_0 : i32, i32
  }
  func.func @transform_6(%arg0: i32) -> (i32, i32) {
    %c0_i32 = arith.constant 0 : i32
    %c0_i32_0 = arith.constant 0 : i32
    %c0_i32_1 = arith.constant 0 : i32
    return %c0_i32, %c0_i32_0 : i32, i32
  }
  func.func @transform_7(%arg0: i32) -> (i32, i32) {
    %c0_i32 = arith.constant 0 : i32
    %c0_i32_0 = arith.constant 0 : i32
    %c0_i32_1 = arith.constant 0 : i32
    return %c0_i32, %c0_i32_0 : i32, i32
  }
  func.func @transform_8(%arg0: i32) -> (i32, i32) {
    %c0_i32 = arith.constant 0 : i32
    %c0_i32_0 = arith.constant 0 : i32
    %c0_i32_1 = arith.constant 0 : i32
    return %c0_i32, %c0_i32_0 : i32, i32
  }
  func.func @transform_9(%arg0: i32) -> (i32, i32) {
    %c0_i32 = arith.constant 0 : i32
    %c0_i32_0 = arith.constant 0 : i32
    %c0_i32_1 = arith.constant 0 : i32
    return %c0_i32, %c0_i32_0 : i32, i32
  }
  func.func @transform_10(%arg0: i32) -> i32 {
    %c0_i32 = arith.constant 0 : i32
    %c0_i32_0 = arith.constant 0 : i32
    return %c0_i32 : i32
  }
  func.func @transform_11(%arg0: i32) -> (i32, i32) {
    %c0_i32 = arith.constant 0 : i32
    %c0_i32_0 = arith.constant 0 : i32
    return %c0_i32, %arg0 : i32, i32
  }
}

</mosaic_0001>

<bundles_post_ra>
// kernel: tpu_custom_call.1
= control target key start
LH: loop header
LB: loop body
LE: loop exit
PB: predicated region body
PF: predicated region fallthrough
CT: control target
= control target key end

     0   :  { %17 = vsyncpa [#allocation4], 0  ;;  %s454_s0 = inlined_call_operand.hbm [shape: f32[8,16], index: 0, kind: input, shape index: {}]   ;;  %s455_s1 = inlined_call_operand.hbm [shape: f32[8,8], index: 1, kind: input, shape index: {}]   ;;  %s456_s2 = inlined_call_operand.vmem [shape: f32[8,4], index: 2, kind: input, shape index: {}]   ;;  %s457_s3 = inlined_call_operand.vmem [shape: f32[8,4], index: 3, kind: input, shape index: {}]   ;;  %s458_s4 = inlined_call_operand.vmem [shape: f32[16,128], index: 4, kind: input, shape index: {}]   ;;  %s459_s5 = inlined_call_operand.vmem [shape: f32[8,128], index: 5, kind: input, shape index: {}]   ;;  %s460_s6 = inlined_call_operand.hbm [shape: f32[4,128], index: 6, kind: input, shape index: {}]   ;;  %s461_s7 = inlined_call_operand.vmem [shape: f32[4,128], index: 7, kind: input, shape index: {}]   ;;  %s462_s8 = inlined_call_operand.vmem [shape: f32[1,128], index: 8, kind: input, shape index: {}]   ;;  %s463_s9 = inlined_call_operand.vmem [shape: f32[1,128], index: 9, kind: input, shape index: {}]   ;;  %s464_s10 = inlined_call_operand.<no memory space> [shape: f32[1], index: 10, kind: input, shape index: {}]   ;;  %s465_s11 = inlined_call_operand.hbm [shape: f32[1,8], index: 11, kind: output, shape index: {}]  }
   0x1   :  { %18 = vsyncpa [#allocation7], 0  ;;  %s36_s19 = sshll.u32 %s455_s1, 4  ;;  %s37_s19 = int_to_ptr.hbm [resolvable:$true] %s36_s19 }
   0x2   :  { %19 = vsyncpa [#allocation5], 0  ;;  %s349_s20 = smov [#allocation6]   ;;  %s25_s24 = sshll.u32 %s454_s0, 4  ;;  %s26_s24 = int_to_ptr.hbm [resolvable:$true] %s25_s24 }
   0x3   :  { %s38_s21 = sshll.u32 %s349_s20, 4  ;;  %s350_s25 = smov [#allocation3]   ;;  %s39_s21 = int_to_ptr.vmem [resolvable:$true] %s38_s21 }
   0x4   :  { %41 = dma.hbm_to_vmem [thread:$0]  %s37_s19, 128, %s39_s21, [#allocation7]  }
   0x5   :  { %s27_s26 = sshll.u32 %s350_s25, 4  ;;  %s55_s29 = sshll.u32 %s460_s6, 4  ;;  %s28_s26 = int_to_ptr.vmem [resolvable:$true] %s27_s26  ;;  %s56_s29 = int_to_ptr.hbm [resolvable:$true] %s55_s29 }
   0x6   :  { %30 = dma.hbm_to_vmem [thread:$0]  %s26_s24, 128, %s28_s26, [#allocation4]  }
   0x7   :  { %s351_s1 = smov [#allocation8]  }
   0x8   :  { %s57_s30 = sshll.u32 %s351_s1, 4  ;;  %s58_s30 = int_to_ptr.vmem [resolvable:$true] %s57_s30 }
   0x9   :  { %60 = dma.hbm_to_vmem [thread:$0]  %s56_s29, 64, %s58_s30, [#allocation7]  }
   0xa   :  { %343 = dma.done.wait [#allocation4], 128  }
   0xb   :  { %344 = vsyncadd [#allocation4], 4294967168 }
   0xc   :  { %345 = dma.done.wait [#allocation7], 192  }
   0xd   :  { %346 = vsyncadd [#allocation7], 4294967104  ;;  %vm140_vm0 = vcmask 1043456   ;;  %vm136_vm1 = vcmask 31744   ;;  %v135_v0 = vld [vmem:[#allocation8] sm:$0xf]  ;;  %v211_v21 = vlaneseq  ;;  %v208_v22 = vstv %s464_s10 }
   0xe   :  { %v134_v1 = vld [vmem:[%s456_s2] sm:$0xff]  ;;  %v83_v2 = vld [vmem:[%s458_s4 + $0x8] sm:$0xff]  ;;  %237 = vmatpush.msk.msra.mxu2 %vm140_vm0, %v135_v0  ;;  %vm86_vm2 = vcmask 64512   ;;  %vm110_vm3 = vcmask 130048   ;;  %s352_s23 = smov [#allocation9]   ;;  %s224_s26 = sshll.u32 %s465_s11, 4  ;;  %s225_s26 = int_to_ptr.hbm [resolvable:$true] %s224_s26 }
   0xf   :  { %128 = vmatpush.msra.mxu1 %v83_v2  ;;  %v166_v3 = vld [vmem:[%s461_s7] sm:$0xf]  ;;  %238 = vmatmul.msk.f32.vlgmr.msra.gmra.mxu2 %vm136_vm1, %v134_v1  ;;  %v84_v7 = vld [vmem:[#allocation6] sm:$0xff]  ;;  %v212_v23 = vand.u32 127, %v211_v21  ;;  %s222_s24 = sshll.u32 %s352_s23, 4  ;;  %vm215_vm4 = vcmask 57344   ;;  %s223_s24 = int_to_ptr.vmem [resolvable:$true] %s222_s24 }
  0x10   :  { %v165_v4 = vld [vmem:[%s457_s3] sm:$0xff]  ;;  %239 = vmatpush.msk.msra.mxu3 %vm140_vm0, %v166_v3 }
  0x11   :  { %v85_v5 = vld [vmem:[%s459_s5] sm:$0xff]  ;;  %240 = vmatmul.msk.f32.vlgmr.msra.gmra.mxu3 %vm136_vm1, %v165_v4 }
  0x12   :  { %v82_v6 = vld [vmem:[%s458_s4] sm:$0xff]  ;;  %105 = vmatpush.msra.mxu0 %v85_v5 }
  0x13   :  { %v81_v8 = vld [vmem:[#allocation3] sm:$0xff]  ;;  %129 = vmatpush.msra.mxu1 %v82_v6  ;;  %235 = vmatmul.msk.f32.vlgmr.msra.gmra.mxu0 %vm86_vm2, %v84_v7 }
  0x14   :  { %236 = vmatmul.msk.f32.vlgmr.msra.gmra.mxu1 %vm110_vm3, %v81_v8  ;;  %v245_v15 = vld [vmem:[%s462_s8] ss:$0 sm:$0xff] }
  0x15   :  { %v246_v18 = vld [vmem:[%s463_s9] ss:$0 sm:$0xff] }
  0x90   :  { %v107_v9 = vpop.f32.mrf.mxu0 }
  0x91   :  { %v131_v10 = vpop.f32.mrf.mxu1 }
  0x92   :  { %v132_v11 = vadd.f32 %v131_v10, %v107_v9  ;;  %v161_v12 = vpop.f32.mrf.mxu2 }
  0x94   :  { %v164_v13 = vadd.f32 %v161_v12, %v132_v11  ;;  %v190_v14 = vpop.f32.mrf.mxu3 }
  0x96   :  { %v193_v16 = vadd.f32 %v190_v14, %v164_v13 }
  0x98   :  { %v198_v17 = vadd.f32 %v245_v15, %v193_v16 }
  0x9a   :  { %v199_v19 = vmax.f32 %v198_v17, 0.0 }
  0x9c   :  { %v204_v20 = vmul.f32 %v246_v18, %v199_v19 }
  0x9e   :  { %205 = vadd.xlane.f32.xlu0 %v204_v20 }
 0x111   :  { %v206_v24 = vpop.xlane.xlu0 %205 }
 0x112   :  { %v209_v25 = vadd.f32 %v208_v22, %v206_v24 }
 0x114   :  { %v213_v26 = vperm.slane %v209_v25, %v212_v23 }
 0x116   :  { %216 = vst.msk [vmem:[#allocation9] sm:$0x1] %vm215_vm4, %v213_v26 }
 0x117   :  { %227 = dma.vmem_to_hbm [thread:$0]  %s223_s24, 16, %s225_s26, [#allocation5]  }
 0x118   :  { %347 = dma.done.wait [#allocation5], 16  }
 0x119   :  { %348 = vsyncadd [#allocation5], 4294967280 }
 0x11a   :  { %232 = vsyncpa [#allocation4], 1 }
 0x11b   :  { %233 = vsyncpa [#allocation7], 1 }
 0x11c   :  { %234 = vsyncpa [#allocation5], 1 }

</bundles_post_ra>
